<compile_context>
chip_gen: v7x
topology: tpu7x:2x2x1
jax: 0.10.0
libtpu: 0.0.40
codegen_flags: <defaults>
</compile_context>

<pallas_src>
import jax
import jax.numpy as jnp
from jax.experimental import pallas as pl
from jax.experimental.pallas import tpu as pltpu


def _round_up(n, m):
    return ((n + m - 1) // m) * m


def _sigmoid(x):
    # Exact f32 sigmoid; exp lowers to the EUP (its own bundle slot).
    return 1.0 / (1.0 + jnp.exp(-x))


def mlp_kernel(x_ref, w1_ref, b1_ref, w2_ref, b2_ref, w3_ref, b3_ref, o_ref):
    x = x_ref[...]                                                     # (TB, d)
    h1 = _sigmoid(
        jnp.dot(x, w1_ref[...], preferred_element_type=jnp.float32) + b1_ref[...]
    )                                                                  # (TB, n2p)
    h2 = _sigmoid(
        jnp.dot(h1, w2_ref[...], preferred_element_type=jnp.float32) + b2_ref[...]
    )                                                                  # (TB, n3p)
    # Final layer: single output column -> elementwise mul (VPU) + cross-lane
    # sum (XLU) instead of an almost-empty MXU matmul.
    z3 = jnp.sum(h2 * w3_ref[...], axis=-1, keepdims=True) + b3_ref[...]   # (TB, 1)
    o_ref[...] = _sigmoid(z3).astype(o_ref.dtype)


def _choose_batch_tile(B, d, n2p, n3p, vmem_budget=16 * 1024 * 1024):
    # Rough f32 bytes live per batch row: double-buffered x tile + hidden
    # activations + double-buffered 1-wide output column.
    per_row = 4 * (2 * d + n2p + n3p + 2)
    tb = vmem_budget // max(per_row, 1)
    tb = max(8, min(tb, 4096))
    tb = (tb // 8) * 8                      # sublane-aligned batch tile
    if B <= tb:
        return _round_up(max(B, 1), 8)
    return tb


def modele_forward(x, params):
    """x: (B, d) float32. params: dict of (w1, b1, w2, b2, w3, b3) with
    weights in (in, out) layout."""
    w1, b1, w2, b2, w3, b3 = (params["w1"], params["b1"], params["w2"],
                              params["b2"], params["w3"], params["b3"])
    B, d = x.shape
    n2, n3 = w1.shape[1], w2.shape[1]

    # Zero-pad hidden widths to 128 lanes (semantics-preserving, see header).
    n2p = _round_up(n2, 128)
    n3p = _round_up(n3, 128)
    w1p = jnp.zeros((d, n2p), jnp.float32).at[:, :n2].set(w1)
    b1p = jnp.zeros((1, n2p), jnp.float32).at[:, :n2].set(b1.reshape(1, n2))
    w2p = jnp.zeros((n2p, n3p), jnp.float32).at[:n2, :n3].set(w2)
    b2p = jnp.zeros((1, n3p), jnp.float32).at[:, :n3].set(b2.reshape(1, n3))
    w3p = jnp.zeros((1, n3p), jnp.float32).at[:, :n3].set(w3.reshape(1, n3))
    b3p = b3.reshape(1, 1).astype(jnp.float32)

    # Batch grid with VMEM-budgeted tiles.  Ragged final block is handled by
    # Pallas edge masking (no HBM pad/copy of x needed).
    TB = _choose_batch_tile(B, d, n2p, n3p)
    grid = (pl.cdiv(B, TB),)

    const = lambda shape: pl.BlockSpec(shape, lambda i: (0, 0))

    cost = pl.CostEstimate(
        flops=2 * B * (d * n2 + n2 * n3 + n3),
        transcendentals=B * (n2 + n3 + 1),
        bytes_accessed=4 * (B * d + B + d * n2 + n2 + n2 * n3 + n3 + n3 + 1),
    )

    out = pl.pallas_call(
        mlp_kernel,
        out_shape=jax.ShapeDtypeStruct((B, 1), jnp.float32),
        grid=grid,
        in_specs=[
            pl.BlockSpec((TB, d), lambda i: (i, 0)),   # streamed / pipelined
            const((d, n2p)), const((1, n2p)),          # weights stay resident
            const((n2p, n3p)), const((1, n3p)),
            const((1, n3p)), const((1, 1)),
        ],
        out_specs=pl.BlockSpec((TB, 1), lambda i: (i, 0)),
        compiler_params=pltpu.CompilerParams(
            dimension_semantics=("parallel",),         # megacore on v7x
            vmem_limit_bytes=32 * 1024 * 1024,         # safe on v5e/v6e/v7x
        ),
        cost_estimate=cost,
    )(x, w1p, b1p, w2p, b2p, w3p, b3p)

    return out


def init_params(key, d):
    """Deterministic init matching PyTorch Linear shapes:
       l1: d -> d//2, l2: d//2 -> d//3, l3: d//3 -> 1.
       U(-1/sqrt(fan_in), 1/sqrt(fan_in)) like torch.nn.Linear default."""
    n1, n2, n3 = d, int(d / 2), int(d / 3)
    keys = jax.random.split(key, 6)

    def uni(k, shape, fan_in):
        bound = 1.0 / jnp.sqrt(jnp.float32(fan_in))
        return jax.random.uniform(k, shape, jnp.float32, -bound, bound)

    return {
        "w1": uni(keys[0], (n1, n2), n1),
        "b1": uni(keys[1], (1, n2), n1),
        "w2": uni(keys[2], (n2, n3), n2),
        "b2": uni(keys[3], (1, n3), n2),
        "w3": uni(keys[4], (n3, 1), n3),
        "b3": uni(keys[5], (1, 1), n3),
    }


def reference_forward(x, params):
    h1 = jax.nn.sigmoid(x @ params["w1"] + params["b1"])
    h2 = jax.nn.sigmoid(h1 @ params["w2"] + params["b2"])
    return jax.nn.sigmoid(h2 @ params["w3"] + params["b3"])


if __name__ == "__main__":
    key = jax.random.PRNGKey(0)
    k_x, k_p = jax.random.split(key)

    B, d = 8, 32  # layers: 32 -> 16 -> 10 -> 1
    x = jax.random.normal(k_x, (B, d), jnp.float32)
    params = init_params(k_p, d)

    out = jax.block_until_ready(modele_forward(x, params))
    ref = reference_forward(x, params)

    assert out.shape == (B, 1), out.shape
    assert jnp.allclose(out, ref, atol=1e-5, rtol=1e-5), "mismatch vs reference"

    print("KERNEL_OK")
</pallas_src>

<mosaic_0001>
module attributes {stable_mosaic.version = 11 : i64} {
  func.func @mlp_kernel(%arg0: i32, %arg1: memref<8x32xf32, #tpu.memory_space<vmem>>, %arg2: memref<32x128xf32, #tpu.memory_space<vmem>>, %arg3: memref<1x128xf32, #tpu.memory_space<vmem>>, %arg4: memref<128x128xf32, #tpu.memory_space<vmem>>, %arg5: memref<1x128xf32, #tpu.memory_space<vmem>>, %arg6: memref<1x128xf32, #tpu.memory_space<vmem>>, %arg7: memref<1x1xf32, #tpu.memory_space<vmem>>, %arg8: memref<8x1xf32, #tpu.memory_space<vmem>>) attributes {dimension_semantics = [#tpu.dimension_semantics<parallel>], iteration_bounds = array<i64: 1>, scalar_prefetch = 0 : i64, scratch_operands = 0 : i64, tpu.core_type = #tpu.core_type<tc>, window_params = [{transform_indices = @transform_0, window_bounds = array<i64: 8, 32>}, {pipeline_mode = #tpu.pipeline_mode<synchronous>, transform_indices = @transform_1, window_bounds = array<i64: 32, 128>}, {pipeline_mode = #tpu.pipeline_mode<synchronous>, transform_indices = @transform_2, window_bounds = array<i64: 1, 128>}, {pipeline_mode = #tpu.pipeline_mode<synchronous>, transform_indices = @transform_3, window_bounds = array<i64: 128, 128>}, {pipeline_mode = #tpu.pipeline_mode<synchronous>, transform_indices = @transform_4, window_bounds = array<i64: 1, 128>}, {pipeline_mode = #tpu.pipeline_mode<synchronous>, transform_indices = @transform_5, window_bounds = array<i64: 1, 128>}, {pipeline_mode = #tpu.pipeline_mode<synchronous>, transform_indices = @transform_6, window_bounds = array<i64: 1, 1>}, {transform_indices = @transform_7, window_bounds = array<i64: 8, 1>}]} {
    %c0 = arith.constant 0 : index
    %c0_0 = arith.constant 0 : index
    %0 = vector.load %arg1[%c0, %c0_0] : memref<8x32xf32, #tpu.memory_space<vmem>>, vector<8x32xf32>
    %c0_1 = arith.constant 0 : index
    %c0_2 = arith.constant 0 : index
    %1 = vector.load %arg2[%c0_1, %c0_2] : memref<32x128xf32, #tpu.memory_space<vmem>>, vector<32x128xf32>
    %cst = arith.constant dense<0.000000e+00> : vector<8x128xf32>
    %2 = tpu.matmul %0, %1, %cst {dimension_numbers = #tpu.dot_dimension_numbers<[1], [0], [0], [1], [0, 0, 1, 1], [], []>} : vector<8x32xf32>, vector<32x128xf32>, vector<8x128xf32> -> vector<8x128xf32>
    %c0_3 = arith.constant 0 : index
    %c0_4 = arith.constant 0 : index
    %3 = vector.load %arg3[%c0_3, %c0_4] : memref<1x128xf32, #tpu.memory_space<vmem>>, vector<1x128xf32>
    %4 = vector.broadcast %3 : vector<1x128xf32> to vector<8x128xf32>
    %5 = arith.addf %2, %4 : vector<8x128xf32>
    %cst_5 = arith.constant 0.000000e+00 : f32
    %6 = vector.broadcast %cst_5 : f32 to vector<8x128xf32>
    %7 = arith.subf %6, %5 : vector<8x128xf32>
    %8 = math.exp %7 : vector<8x128xf32>
    %cst_6 = arith.constant 1.000000e+00 : f32
    %9 = vector.broadcast %cst_6 : f32 to vector<8x128xf32>
    %10 = arith.addf %9, %8 : vector<8x128xf32>
    %cst_7 = arith.constant 1.000000e+00 : f32
    %11 = vector.broadcast %cst_7 : f32 to vector<8x128xf32>
    %12 = arith.divf %11, %10 : vector<8x128xf32>
    %c0_8 = arith.constant 0 : index
    %c0_9 = arith.constant 0 : index
    %13 = vector.load %arg4[%c0_8, %c0_9] : memref<128x128xf32, #tpu.memory_space<vmem>>, vector<128x128xf32>
    %cst_10 = arith.constant dense<0.000000e+00> : vector<8x128xf32>
    %14 = tpu.matmul %12, %13, %cst_10 {dimension_numbers = #tpu.dot_dimension_numbers<[1], [0], [0], [1], [0, 0, 1, 1], [], []>} : vector<8x128xf32>, vector<128x128xf32>, vector<8x128xf32> -> vector<8x128xf32>
    %c0_11 = arith.constant 0 : index
    %c0_12 = arith.constant 0 : index
    %15 = vector.load %arg5[%c0_11, %c0_12] : memref<1x128xf32, #tpu.memory_space<vmem>>, vector<1x128xf32>
    %16 = vector.broadcast %15 : vector<1x128xf32> to vector<8x128xf32>
    %17 = arith.addf %14, %16 : vector<8x128xf32>
    %cst_13 = arith.constant 0.000000e+00 : f32
    %18 = vector.broadcast %cst_13 : f32 to vector<8x128xf32>
    %19 = arith.subf %18, %17 : vector<8x128xf32>
    %20 = math.exp %19 : vector<8x128xf32>
    %cst_14 = arith.constant 1.000000e+00 : f32
    %21 = vector.broadcast %cst_14 : f32 to vector<8x128xf32>
    %22 = arith.addf %21, %20 : vector<8x128xf32>
    %cst_15 = arith.constant 1.000000e+00 : f32
    %23 = vector.broadcast %cst_15 : f32 to vector<8x128xf32>
    %24 = arith.divf %23, %22 : vector<8x128xf32>
    %c0_16 = arith.constant 0 : index
    %c0_17 = arith.constant 0 : index
    %25 = vector.load %arg6[%c0_16, %c0_17] : memref<1x128xf32, #tpu.memory_space<vmem>>, vector<1x128xf32>
    %26 = vector.broadcast %25 : vector<1x128xf32> to vector<8x128xf32>
    %27 = arith.mulf %24, %26 : vector<8x128xf32>
    %cst_18 = arith.constant dense<0.000000e+00> : vector<8xf32>
    %28 = vector.multi_reduction <add>, %27, %cst_18 [1] : vector<8x128xf32> to vector<8xf32>
    %29 = vector.shape_cast %28 : vector<8xf32> to vector<8x1xf32>
    %c0_19 = arith.constant 0 : index
    %c0_20 = arith.constant 0 : index
    %30 = vector.load %arg7[%c0_19, %c0_20] : memref<1x1xf32, #tpu.memory_space<vmem>>, vector<1x1xf32>
    %31 = vector.broadcast %30 : vector<1x1xf32> to vector<8x1xf32>
    %32 = arith.addf %29, %31 : vector<8x1xf32>
    %cst_21 = arith.constant 0.000000e+00 : f32
    %33 = vector.broadcast %cst_21 : f32 to vector<8x1xf32>
    %34 = arith.subf %33, %32 : vector<8x1xf32>
    %35 = math.exp %34 : vector<8x1xf32>
    %cst_22 = arith.constant 1.000000e+00 : f32
    %36 = vector.broadcast %cst_22 : f32 to vector<8x1xf32>
    %37 = arith.addf %36, %35 : vector<8x1xf32>
    %cst_23 = arith.constant 1.000000e+00 : f32
    %38 = vector.broadcast %cst_23 : f32 to vector<8x1xf32>
    %39 = arith.divf %38, %37 : vector<8x1xf32>
    %c0_24 = arith.constant 0 : index
    %c0_25 = arith.constant 0 : index
    %40 = vector.load %arg8[%c0_24, %c0_25] : memref<8x1xf32, #tpu.memory_space<vmem>>, vector<8x1xf32>
    tpu.vector_store %arg8[%c0_24, %c0_25], %39 {strides = array<i32>} : memref<8x1xf32, #tpu.memory_space<vmem>>, vector<8x1xf32>,
    return
  }
  func.func @transform_0(%arg0: i32) -> (i32, i32) {
    %c0_i32 = arith.constant 0 : i32
    %c0_i32_0 = arith.constant 0 : i32
    return %arg0, %c0_i32 : i32, i32
  }
  func.func @transform_1(%arg0: i32) -> (i32, i32) {
    %c0_i32 = arith.constant 0 : i32
    %c0_i32_0 = arith.constant 0 : i32
    %c0_i32_1 = arith.constant 0 : i32
    return %c0_i32, %c0_i32_0 : i32, i32
  }
  func.func @transform_2(%arg0: i32) -> (i32, i32) {
    %c0_i32 = arith.constant 0 : i32
    %c0_i32_0 = arith.constant 0 : i32
    %c0_i32_1 = arith.constant 0 : i32
    return %c0_i32, %c0_i32_0 : i32, i32
  }
  func.func @transform_3(%arg0: i32) -> (i32, i32) {
    %c0_i32 = arith.constant 0 : i32
    %c0_i32_0 = arith.constant 0 : i32
    %c0_i32_1 = arith.constant 0 : i32
    return %c0_i32, %c0_i32_0 : i32, i32
  }
  func.func @transform_4(%arg0: i32) -> (i32, i32) {
    %c0_i32 = arith.constant 0 : i32
    %c0_i32_0 = arith.constant 0 : i32
    %c0_i32_1 = arith.constant 0 : i32
    return %c0_i32, %c0_i32_0 : i32, i32
  }
  func.func @transform_5(%arg0: i32) -> (i32, i32) {
    %c0_i32 = arith.constant 0 : i32
    %c0_i32_0 = arith.constant 0 : i32
    %c0_i32_1 = arith.constant 0 : i32
    return %c0_i32, %c0_i32_0 : i32, i32
  }
  func.func @transform_6(%arg0: i32) -> (i32, i32) {
    %c0_i32 = arith.constant 0 : i32
    %c0_i32_0 = arith.constant 0 : i32
    %c0_i32_1 = arith.constant 0 : i32
    return %c0_i32, %c0_i32_0 : i32, i32
  }
  func.func @transform_7(%arg0: i32) -> (i32, i32) {
    %c0_i32 = arith.constant 0 : i32
    %c0_i32_0 = arith.constant 0 : i32
    return %arg0, %c0_i32 : i32, i32
  }
}

</mosaic_0001>

<bundles_post_ra>
// kernel: tpu_custom_call.1
= control target key start
LH: loop header
LB: loop body
LE: loop exit
PB: predicated region body
PF: predicated region fallthrough
CT: control target
= control target key end

     0   :  { %s588_s0 = inlined_call_operand.hbm [shape: f32[8,32], index: 0, kind: input, shape index: {}]   ;;  %s589_s1 = inlined_call_operand.hbm [shape: f32[32,128], index: 1, kind: input, shape index: {}]   ;;  %s590_s2 = inlined_call_operand.vmem [shape: f32[1,128], index: 2, kind: input, shape index: {}]   ;;  %s591_s3 = inlined_call_operand.hbm [shape: f32[128,128], index: 3, kind: input, shape index: {}]   ;;  %s592_s4 = inlined_call_operand.vmem [shape: f32[1,128], index: 4, kind: input, shape index: {}]   ;;  %s593_s5 = inlined_call_operand.vmem [shape: f32[1,128], index: 5, kind: input, shape index: {}]   ;;  %s594_s6 = inlined_call_operand.<no memory space> [shape: f32[1,1], index: 6, kind: input, shape index: {}]   ;;  %s595_s7 = inlined_call_operand.vmem [shape: f32[8,1], index: 7, kind: output, shape index: {}]  }
   0x1   :  { %v12_v0 = vstv %s594_s6 }
   0x2   :  { %13 = vst [vmem:[#allocation2] sm:$0x1] %v12_v0 }
   0x3   :  { %14 = vsyncpa [#allocation4], 0 }
   0x4   :  { %15 = vsyncpa [#allocation6], 0  ;;  %s483_s26 = smov [#allocation5]   ;;  %s413_s30 = scalar_lea.hbm %s589_s1, 512 }
   0x5   :  { %s31_s27 = sshll.u32 %s483_s26, 4  ;;  %p414_p0 = scmp.ne.s32.totalorder %s589_s1, %s413_s30  ;;  %s32_s27 = int_to_ptr.vmem [resolvable:$true] %s31_s27 }
   0x6   :  { %p417_p1 = scmp.lt.u32.totalorder %s413_s30, %s589_s1 }
   0x8   :  { %p419_p2 = pnand %p417_p1, %p414_p0 }
   0xa   :  { %422 = shalt.err (!%p419_p2)
}
   0xb   :  { %s423_s6 = scalar_lea.vmem %s32_s27, 512  ;;  %p428_p4 = scmp.lt.s32.totalorder %s32_s27, %s32_s27 }
   0xc   :  { %p424_p3 = scmp.ne.s32.totalorder %s32_s27, %s423_s6  ;;  %p429_p5 = scmp.lt.s32.totalorder %s423_s6, %s423_s6 }
   0xe   :  { %p430_p6 = por %p429_p5, %p428_p4 }
  0x10   :  { %p431_p7 = pnand %p430_p6, %p424_p3 }
  0x12   :  { %434 = shalt.err (!%p431_p7)
}
  0x13   :  { %s484_s12 = smov 128   ;;  %s485_s13 = smov 8  }
  0x14   :  { %37 = dma.hbm_to_vmem [thread:$0]  %s589_s1, 512, %s32_s27, [#allocation6], %s484_s12, %s484_s12, %s485_s13  }
  0x15   :  { %s486_s16 = smov [#allocation3]   ;;  %s487_s18 = smov [#allocation7]  }
  0x16   :  { %s22_s17 = sshll.u32 %s486_s16, 4  ;;  %s45_s19 = sshll.u32 %s487_s18, 4  ;;  %s23_s17 = int_to_ptr.vmem [resolvable:$true] %s22_s17  ;;  %s46_s19 = int_to_ptr.vmem [resolvable:$true] %s45_s19 }
  0x17   :  { %s435_s22 = scalar_lea.hbm %s588_s0, 128 }
  0x18   :  { %p436_p8 = scmp.ne.s32.totalorder %s588_s0, %s435_s22  ;;  %p439_p9 = scmp.lt.u32.totalorder %s435_s22, %s588_s0 }
  0x1a   :  { %p441_p10 = pnand %p439_p9, %p436_p8 }
  0x1c   :  { %444 = shalt.err (!%p441_p10)
}
  0x1d   :  { %s445_s1 = scalar_lea.vmem %s23_s17, 128  ;;  %p450_p12 = scmp.lt.s32.totalorder %s23_s17, %s23_s17 }
  0x1e   :  { %p446_p11 = scmp.ne.s32.totalorder %s23_s17, %s445_s1  ;;  %p451_p13 = scmp.lt.s32.totalorder %s445_s1, %s445_s1 }
  0x20   :  { %p452_p0 = por %p451_p13, %p450_p12 }
  0x22   :  { %p453_p1 = pnand %p452_p0, %p446_p11 }
  0x24   :  { %456 = shalt.err (!%p453_p1)
}
  0x25   :  { %25 = dma.hbm_to_vmem [thread:$0]  %s588_s0, 128, %s23_s17, [#allocation4]  }
  0x26   :  { %s457_s8 = scalar_lea.hbm %s591_s3, 2048 }
  0x27   :  { %p458_p2 = scmp.ne.s32.totalorder %s591_s3, %s457_s8  ;;  %p461_p3 = scmp.lt.u32.totalorder %s457_s8, %s591_s3 }
  0x29   :  { %p463_p4 = pnand %p461_p3, %p458_p2 }
  0x2b   :  { %466 = shalt.err (!%p463_p4)
}
  0x2c   :  { %s467_s14 = scalar_lea.vmem %s46_s19, 2048  ;;  %p472_p6 = scmp.lt.s32.totalorder %s46_s19, %s46_s19 }
  0x2d   :  { %p468_p5 = scmp.ne.s32.totalorder %s46_s19, %s467_s14  ;;  %p473_p7 = scmp.lt.s32.totalorder %s467_s14, %s467_s14 }
  0x2f   :  { %p474_p8 = por %p473_p7, %p472_p6 }
  0x31   :  { %p475_p9 = pnand %p474_p8, %p468_p5 }
  0x33   :  { %478 = shalt.err (!%p475_p9)
}
  0x34   :  { %51 = dma.hbm_to_vmem [thread:$0]  %s591_s3, 2048, %s46_s19, [#allocation6], %s484_s12, %s484_s12, %s485_s13  }
  0x35   :  { %479 = dma.done.wait [#allocation4], 128  }
  0x36   :  { %480 = vsyncadd [#allocation4], 4294967168 }
  0x37   :  { %481 = dma.done.wait [#allocation6], 2560  }
  0x38   :  { %482 = vsyncadd [#allocation6], 4294964736  ;;  %v488_v1 = vmov 0.0|0.0   ;;  %vm489_vm0 = vmmov 0   ;;  %v490_v2 = vmov 0.0   ;;  %v68_v3 = vld [vmem:[#allocation5] sm:$0xff] }
  0x39   :  { %363 = vmatprep.subr.bf16.mxu0 %v488_v1  ;;  %325 = vmatprep.mubr.msk.f32.mxu0 %vm489_vm0, %v490_v2  ;;  %v69_v4 = vld [vmem:[#allocation5 + $0x8] sm:$0xff]  ;;  %v70_v5 = vld [vmem:[#allocation5 + $0x10] sm:$0xff]  ;;  %v71_v7 = vld [vmem:[#allocation5 + $0x18] sm:$0xff]  ;;  %vm79_vm1 = vcmask 261120   ;;  %vm282_vm2 = vcmask 7168  }
  0x3a   :  { %369 = vmatprep.subr.bf16.mxu1 %v488_v1  ;;  %360 = vmatprep.mubr.msk.f32.mxu1 %vm489_vm0, %v490_v2  ;;  %v364_v6 = vpack.c.bf16 %v69_v4, %v68_v3  ;;  %v367_v8 = vpack.c.bf16 %v71_v7, %v70_v5  ;;  %v67_v9 = vld [vmem:[#allocation3] sm:$0xff]  ;;  %v159_v10 = vld [vmem:[#allocation7] sm:$0xff]  ;;  %v160_v11 = vld [vmem:[#allocation7 + $0x8] sm:$0xff] }
  0x3b   :  { %v370_v12 = vpack.c.bf16 %v160_v11, %v159_v10  ;;  %v161_v13 = vld [vmem:[#allocation7 + $0x10] sm:$0xff]  ;;  %v162_v14 = vld [vmem:[#allocation7 + $0x18] sm:$0xff]  ;;  %v163_v16 = vld [vmem:[#allocation7 + $0x20] sm:$0xff] }
  0x3c   :  { %365 = vmatpush3.bf16.msra.mxu0 %v364_v6  ;;  %v373_v15 = vpack.c.bf16 %v162_v14, %v161_v13  ;;  %v164_v17 = vld [vmem:[#allocation7 + $0x28] sm:$0xff]  ;;  %v165_v19 = vld [vmem:[#allocation7 + $0x30] sm:$0xff]  ;;  %v166_v20 = vld [vmem:[#allocation7 + $0x38] sm:$0xff] }
  0x3d   :  { %366 = vmatprep.subr.bf16.mxu0 %v488_v1  ;;  %371 = vmatpush3.bf16.msra.mxu1 %v370_v12  ;;  %v376_v18 = vpack.c.bf16 %v164_v17, %v163_v16  ;;  %v379_v21 = vpack.c.bf16 %v166_v20, %v165_v19  ;;  %v167_v22 = vld [vmem:[#allocation7 + $0x40] sm:$0xff]  ;;  %v168_v23 = vld [vmem:[#allocation7 + $0x48] sm:$0xff]  ;;  %v169_v25 = vld [vmem:[#allocation7 + $0x50] sm:$0xff] }
  0x3e   :  { %372 = vmatprep.subr.bf16.mxu1 %v488_v1  ;;  %v382_v24 = vpack.c.bf16 %v168_v23, %v167_v22  ;;  %v170_v26 = vld [vmem:[#allocation7 + $0x58] sm:$0xff]  ;;  %v171_v28 = vld [vmem:[#allocation7 + $0x60] sm:$0xff]  ;;  %v172_v29 = vld [vmem:[#allocation7 + $0x68] sm:$0xff] }
  0x3f   :  { %v385_v27 = vpack.c.bf16 %v170_v26, %v169_v25  ;;  %v388_v30 = vpack.c.bf16 %v172_v29, %v171_v28  ;;  %v173_v31 = vld [vmem:[#allocation7 + $0x70] sm:$0xff]  ;;  %v174_v32 = vld [vmem:[#allocation7 + $0x78] sm:$0xff] }
  0x40   :  { %368 = vmatpush3.bf16.msra.mxu0 %v367_v8  ;;  %v391_v33 = vpack.c.bf16 %v174_v32, %v173_v31  ;;  %v290_v34 = vld [vmem:[%s590_s2] ss:$0 sm:$0xff] }
  0x41   :  { %374 = vmatpush3.bf16.msra.mxu1 %v373_v15  ;;  %v292_v43 = vld [vmem:[%s592_s4] ss:$0 sm:$0xff] }
  0x42   :  { %375 = vmatprep.subr.bf16.mxu1 %v488_v1  ;;  %v293_v51 = vld [vmem:[%s593_s5] ss:$0 sm:$0xff] }
  0x43   :  { %326 = vmatmul.mubr.msk.f32.vlgmr.msra.gmra.mrb[0].mxu0 %vm79_vm1, %v67_v9  ;;  %v294_v54 = vld [vmem:[#allocation2] ss:$0 sm:$0xff] }
  0x45   :  { %377 = vmatpush3.bf16.msra.mxu1 %v376_v18 }
  0x46   :  { %378 = vmatprep.subr.bf16.mxu1 %v488_v1 }
  0x49   :  { %380 = vmatpush3.bf16.msra.mxu1 %v379_v21 }
  0x4a   :  { %381 = vmatprep.subr.bf16.mxu1 %v488_v1 }
  0x4d   :  { %383 = vmatpush3.bf16.msra.mxu1 %v382_v24 }
  0x4e   :  { %384 = vmatprep.subr.bf16.mxu1 %v488_v1 }
  0x51   :  { %386 = vmatpush3.bf16.msra.mxu1 %v385_v27 }
  0x52   :  { %387 = vmatprep.subr.bf16.mxu1 %v488_v1 }
  0x55   :  { %389 = vmatpush3.bf16.msra.mxu1 %v388_v30 }
  0x56   :  { %390 = vmatprep.subr.bf16.mxu1 %v488_v1 }
  0x59   :  { %392 = vmatpush3.bf16.msra.mxu1 %v391_v33 }
 0x116   :  { %v149_v35 = vpop.f32.mrb[0].mxu0 }
 0x117   :  { %v150_v36 = vadd.f32 %v290_v34, %v149_v35  ;;  %v327_v37 = vpop.f32.mrb[1].mxu0 }
 0x119   :  { %v153_v38 = vsub.f32 0.0, %v150_v36 }
 0x11b   :  { %v154_v39 = vmul.f32 1.442695, %v153_v38 }
 0x11d   :  { %401 = vpow2.f32 %v154_v39 }
 0x127   :  { %v402_v40 = vpop.eup %401 }
 0x128   :  { %v156_v41 = vadd.f32 1.0, %v402_v40 }
 0x12a   :  { %403 = vrcp.f32 %v156_v41 }
 0x134   :  { %v404_v42 = vpop.eup %403 }
 0x135   :  { %361 = vmatmul.mubr.f32.vlgmr.msra.gmra.mrb[0].mxu1 %v404_v42 }
 0x208   :  { %v248_v44 = vpop.f32.mrb[0].mxu1 }
 0x209   :  { %v249_v45 = vadd.f32 %v292_v43, %v248_v44  ;;  %v362_v46 = vpop.f32.mrb[1].mxu1 }
 0x20b   :  { %v252_v47 = vsub.f32 0.0, %v249_v45 }
 0x20d   :  { %v253_v48 = vmul.f32 1.442695, %v252_v47 }
 0x20f   :  { %405 = vpow2.f32 %v253_v48 }
 0x219   :  { %v406_v49 = vpop.eup %405 }
 0x21a   :  { %v255_v50 = vadd.f32 1.0, %v406_v49 }
 0x21c   :  { %407 = vrcp.f32 %v255_v50 }
 0x226   :  { %v408_v52 = vpop.eup %407 }
 0x227   :  { %v265_v53 = vmul.f32 %v408_v52, %v293_v51 }
 0x229   :  { %266 = vadd.xlane.f32.xlu0 %v265_v53 }
 0x2b6   :  { %v267_v55 = vpop.xlane.xlu0 %266 }
 0x2b7   :  { %v275_v56 = vadd.f32 %v294_v54, %v267_v55 }
 0x2b9   :  { %v276_v57 = vsub.f32 0.0, %v275_v56 }
 0x2bb   :  { %v277_v58 = vmul.f32 1.442695, %v276_v57 }
 0x2bd   :  { %409 = vpow2.f32 %v277_v58 }
 0x2c7   :  { %v410_v59 = vpop.eup %409 }
 0x2c8   :  { %v279_v60 = vadd.f32 1.0, %v410_v59 }
 0x2ca   :  { %411 = vrcp.f32 %v279_v60 }
 0x2d4   :  { %v412_v61 = vpop.eup %411 }
 0x2d5   :  { %283 = vst.msk [vmem:[%s595_s7] sm:$0xff] %vm282_vm2, %v412_v61 }
 0x2d6   :  { %288 = vsyncpa [#allocation4], 1 }
 0x2d7   :  { %289 = vsyncpa [#allocation6], 1 }

</bundles_post_ra>
